<compile_context>
chip_gen: v7x
topology: tpu7x:2x2x1
jax: 0.10.0
libtpu: 0.0.40
codegen_flags: <defaults>
</compile_context>

<pallas_src>
import functools

import jax
import jax.numpy as jnp
from jax.experimental import pallas as pl
from jax.experimental.pallas import tpu as pltpu

_LANES = 128


def _channel_attention_kernel(x_ref, w1t_ref, w2t_ref, o_ref,
                              sum_acc, max_acc, *,
                              hw_true, hw_tile, n_s):
    # x_ref:   (b_tile, C, hw_tile)   input block
    # w1t_ref: (C, Cr)                conv1 weight, pre-transposed
    # w2t_ref: (Cr, C)                conv2 weight, pre-transposed
    # o_ref:   (b_tile, 1, C)         output (resident across spatial axis)
    # sum_acc / max_acc: (b_tile, C, 128) f32 VMEM accumulators
    s = pl.program_id(1)
    b_tile, C, _ = sum_acc.shape
    n_chunks = hw_tile // _LANES
    multi_step = n_s > 1                        # static
    tail_padded = (n_s * hw_tile) != hw_true    # static
    last_base = (n_s - 1) * hw_tile             # static
    neg = float(jnp.finfo(jnp.float32).min)

    if multi_step:
        @pl.when(s == 0)
        def _init():
            sum_acc[...] = jnp.zeros(sum_acc.shape, jnp.float32)
            max_acc[...] = jnp.full(max_acc.shape, neg, jnp.float32)

    def accumulate(masked):
        # Hoisted broadcasts (JAX does not CSE broadcast_in_dim inside loops).
        zero_part = jnp.zeros((C, _LANES), jnp.float32)
        neg_part = jnp.full((C, _LANES), neg, jnp.float32)
        lane = None
        if masked and (hw_true % _LANES) != 0:
            lane = jax.lax.broadcasted_iota(jnp.int32, (C, _LANES), 1)

        for b in range(b_tile):                 # static unroll over batch rows
            s_part = zero_part
            m_part = neg_part
            for k in range(n_chunks):           # static unroll over lane chunks
                base = last_base + k * _LANES   # only meaningful when masked
                if masked and base >= hw_true:
                    continue                    # chunk entirely padding: skip
                # Per-chunk load straight from the VMEM block (no full-tile
                # materialization): (C, 128) -> a handful of vregs.
                chunk = x_ref[b, :, k * _LANES:(k + 1) * _LANES]
                chunk = chunk.astype(jnp.float32)
                if masked and base + _LANES > hw_true:
                    valid = lane < (hw_true - base)        # single partial chunk
                    s_part = s_part + jnp.where(valid, chunk, 0.0)
                    m_part = jnp.maximum(m_part, jnp.where(valid, chunk, neg))
                else:
                    s_part = s_part + chunk
                    m_part = jnp.maximum(m_part, chunk)
            if multi_step:
                sum_acc[b] = sum_acc[b] + s_part
                max_acc[b] = jnp.maximum(max_acc[b], m_part)
            else:
                sum_acc[b] = s_part
                max_acc[b] = m_part

    if tail_padded and multi_step:
        # Masking only runs on the (single) padded tail step.
        @pl.when(s < n_s - 1)
        def _bulk():
            accumulate(masked=False)

        @pl.when(s == n_s - 1)
        def _tail():
            accumulate(masked=True)
    else:
        accumulate(masked=tail_padded)

    @pl.when(s == n_s - 1)
    def _finalize():
        # One cross-lane reduce per output block; everything else VPU/MXU.
        avg = jnp.sum(sum_acc[...], axis=-1) * (1.0 / hw_true)   # (b_tile, C)
        mx = jnp.max(max_acc[...], axis=-1)                      # (b_tile, C)
        # Fused shared MLP: one layer-1 and one layer-2 matmul for both branches.
        v = jnp.concatenate([avg, mx], axis=0)                   # (2*b_tile, C)
        w1t = w1t_ref[...].astype(jnp.float32)                   # (C, Cr)
        w2t = w2t_ref[...].astype(jnp.float32)                   # (Cr, C)
        h = jnp.maximum(jnp.dot(v, w1t, preferred_element_type=jnp.float32), 0.0)
        y = jnp.dot(h, w2t, preferred_element_type=jnp.float32)  # (2*b_tile, C)
        out = jax.nn.sigmoid(y[:b_tile] + y[b_tile:])            # (b_tile, C)
        o_ref[...] = out.reshape(o_ref.shape).astype(o_ref.dtype)


def channel_attention(x, w1, w2, *, target_block_bytes=2 * 1024 * 1024):
    """x: (B, C, H, W); w1: (C//r, C); w2: (C, C//r) -> (B, C, 1, 1)."""
    B, C, H, W = x.shape
    HW = H * W
    Cr = w1.shape[0]
    itemsize = jnp.dtype(x.dtype).itemsize

    # ---- Tile selection: byte-targeted blocks (~1-4 MiB of x per DMA). ----
    lane_hw = int(pl.cdiv(HW, _LANES)) * _LANES       # lane-aligned spatial size
    per_batch_bytes = C * lane_hw * itemsize

    if per_batch_bytes >= target_block_bytes:
        # Large images: one batch row per block, tile the spatial axis by bytes.
        b_tile = 1
        lanes_target = max(
            _LANES, (target_block_bytes // (C * itemsize)) // _LANES * _LANES)
        n_s = int(pl.cdiv(lane_hw, lanes_target))
        hw_tile = int(pl.cdiv(pl.cdiv(lane_hw, n_s), _LANES)) * _LANES
    else:
        # Small images: whole spatial extent per block, fold batch rows in.
        n_s = 1
        hw_tile = lane_hw
        b_by_bytes = max(1, target_block_bytes // per_batch_bytes)
        # Keep >= 2 batch grid points when B >= 2 (v7x megacore uses both TCs);
        # cap at 8 to bound the static row unroll / accumulator footprint.
        b_cap = int(pl.cdiv(B, 2)) if B >= 2 else 1
        b_tile = int(min(b_by_bytes, b_cap, B, 8))
        # TODO(synk): B == 1 with small HW leaves v7x's second TensorCore idle;
        # a spatial core-split with a cross-core combine is not implemented.

    nb = int(pl.cdiv(B, b_tile))
    B_pad = nb * b_tile
    hw_pad = n_s * hw_tile

    x_flat = x.reshape(B, C, HW)
    if (B_pad != B) or (hw_pad != HW):
        x_flat = jnp.pad(x_flat, ((0, B_pad - B), (0, 0), (0, hw_pad - HW)))

    # Pre-transpose weights once in the wrapper (no in-kernel transposes).
    w1t = jnp.transpose(w1)   # (C, Cr)
    w2t = jnp.transpose(w2)   # (Cr, C)

    # ---- VMEM budget: 75% of physical capacity (v7x 64 MiB -> 48 MiB). ----
    try:
        vmem_cap = int(pltpu.get_tpu_info().vmem_capacity_bytes)
    except Exception:                        # conservative (v7x-safe) fallback
        vmem_cap = 64 * 1024 * 1024
    vmem_budget = (vmem_cap * 3) // 4
    w_bytes = jnp.dtype(w1.dtype).itemsize
    est = (2 * b_tile * C * hw_tile * itemsize          # x block, double-buffered
           + 2 * 2 * C * Cr * w_bytes                   # both weights, buffered
           + 2 * b_tile * C * itemsize                  # output, double-buffered
           + 2 * b_tile * C * _LANES * 4)               # sum/max accumulators
    vmem_limit = int(min(vmem_budget, max(16 * 1024 * 1024, 3 * est)))

    kernel = functools.partial(_channel_attention_kernel,
                               hw_true=HW, hw_tile=hw_tile, n_s=n_s)

    out = pl.pallas_call(
        kernel,
        out_shape=jax.ShapeDtypeStruct((B_pad, 1, C), x.dtype),
        grid_spec=pltpu.PrefetchScalarGridSpec(
            num_scalar_prefetch=0,
            grid=(nb, n_s),                  # spatial reduction axis last
            in_specs=[
                pl.BlockSpec((b_tile, C, hw_tile), lambda b, s: (b, 0, s)),
                # Constant index maps -> weights DMA'd once, not per step.
                pl.BlockSpec((C, Cr), lambda b, s: (0, 0)),
                pl.BlockSpec((Cr, C), lambda b, s: (0, 0)),
            ],
            out_specs=pl.BlockSpec((b_tile, 1, C), lambda b, s: (b, 0, 0)),
            scratch_shapes=[
                pltpu.VMEM((b_tile, C, _LANES), jnp.float32),   # running sum
                pltpu.VMEM((b_tile, C, _LANES), jnp.float32),   # running max
            ],
        ),
        compiler_params=pltpu.CompilerParams(
            dimension_semantics=("parallel", "arbitrary"),
            vmem_limit_bytes=vmem_limit,
        ),
    )(x_flat, w1t, w2t)
    return out[:B].reshape(B, C, 1, 1)


def reference_channel_attention(x, w1, w2):
    avg = jnp.mean(x, axis=(2, 3))               # (B, C)
    mx = jnp.max(x, axis=(2, 3))                 # (B, C)

    def mlp(v):
        h = jnp.maximum(v @ w1.T, 0.0)
        return h @ w2.T

    return jax.nn.sigmoid(mlp(avg) + mlp(mx)).reshape(*x.shape[:2], 1, 1)


if __name__ == "__main__":
    def make_inputs(key, B, C, H, W, ratio):
        Cr = max(C // ratio, 1)
        kx, k1, k2 = jax.random.split(key, 3)
        x = jax.random.normal(kx, (B, C, H, W), dtype=jnp.float32)
        w1 = jax.random.normal(k1, (Cr, C), dtype=jnp.float32) * (2.0 / C) ** 0.5
        w2 = jax.random.normal(k2, (C, Cr), dtype=jnp.float32) * (2.0 / Cr) ** 0.5
        return x, w1, w2

    def check(name, out, ref):
        assert jnp.allclose(out, ref, atol=1e-5, rtol=1e-5), f"mismatch ({name})"

    # Primary config consistent with the module: in_planes=32, ratio=16 -> hidden=2.
    x, w1, w2 = make_inputs(jax.random.PRNGKey(0), 2, 32, 16, 16, 16)
    out = jax.block_until_ready(channel_attention(x, w1, w2))
    assert out.shape == (2, 32, 1, 1)
    check("base", out, reference_channel_attention(x, w1, w2))

    # Ragged spatial size: exercises the tail-chunk lane mask (single block).
    x, w1, w2 = make_inputs(jax.random.PRNGKey(1), 2, 32, 9, 13, 16)
    out = jax.block_until_ready(channel_attention(x, w1, w2))
    check("ragged", out, reference_channel_attention(x, w1, w2))

    # Multiple spatial tiles: cross-grid-step accumulation path
    # (tiny block-byte target forces n_s > 1).
    x, w1, w2 = make_inputs(jax.random.PRNGKey(2), 2, 32, 32, 32, 16)
    out = jax.block_until_ready(
        channel_attention(x, w1, w2, target_block_bytes=32 * 1024))
    check("multi-tile", out, reference_channel_attention(x, w1, w2))

    # Multiple spatial tiles + ragged tail: only the last step is masked.
    x, w1, w2 = make_inputs(jax.random.PRNGKey(3), 2, 32, 23, 27, 16)
    out = jax.block_until_ready(
        channel_attention(x, w1, w2, target_block_bytes=16 * 1024))
    check("multi-tile ragged", out, reference_channel_attention(x, w1, w2))

    # Batch folding (b_tile > 1) with batch padding (B % b_tile != 0).
    x, w1, w2 = make_inputs(jax.random.PRNGKey(4), 5, 32, 8, 8, 16)
    out = jax.block_until_ready(channel_attention(x, w1, w2))
    check("batch-folded", out, reference_channel_attention(x, w1, w2))

    print("KERNEL_OK")
</pallas_src>

<mosaic_0001>
module attributes {stable_mosaic.version = 11 : i64} {
  func.func @_channel_attention_kernel(%arg0: i32, %arg1: i32, %arg2: memref<1x32x256xf32, #tpu.memory_space<vmem>>, %arg3: memref<32x2xf32, #tpu.memory_space<vmem>>, %arg4: memref<2x32xf32, #tpu.memory_space<vmem>>, %arg5: memref<1x1x32xf32, #tpu.memory_space<vmem>>, %arg6: memref<1x32x128xf32, #tpu.memory_space<vmem>>, %arg7: memref<1x32x128xf32, #tpu.memory_space<vmem>>) attributes {dimension_semantics = [#tpu.dimension_semantics<parallel>, #tpu.dimension_semantics<arbitrary>], iteration_bounds = array<i64: 2, 1>, scalar_prefetch = 0 : i64, scratch_operands = 2 : i64, tpu.core_type = #tpu.core_type<tc>, window_params = [{transform_indices = @transform_0, window_bounds = array<i64: 1, 32, 256>}, {pipeline_mode = #tpu.pipeline_mode<synchronous>, transform_indices = @transform_1, window_bounds = array<i64: 32, 2>}, {pipeline_mode = #tpu.pipeline_mode<synchronous>, transform_indices = @transform_2, window_bounds = array<i64: 2, 32>}, {transform_indices = @transform_3, window_bounds = array<i64: 1, 1, 32>}]} {
    %cst = arith.constant 0.000000e+00 : f32
    %0 = vector.broadcast %cst : f32 to vector<32x128xf32>
    %cst_0 = arith.constant -3.40282347E+38 : f32
    %1 = vector.broadcast %cst_0 : f32 to vector<32x128xf32>
    %c0 = arith.constant 0 : index
    %c0_1 = arith.constant 0 : index
    %c0_2 = arith.constant 0 : index
    %2 = vector.load %arg2[%c0, %c0_1, %c0_2] : memref<1x32x256xf32, #tpu.memory_space<vmem>>, vector<1x32x128xf32>
    %3 = vector.shape_cast %2 : vector<1x32x128xf32> to vector<32x128xf32>
    %4 = arith.addf %0, %3 : vector<32x128xf32>
    %5 = arith.maximumf %1, %3 : vector<32x128xf32>
    %c0_3 = arith.constant 0 : index
    %c0_4 = arith.constant 0 : index
    %c128 = arith.constant 128 : index
    %6 = vector.load %arg2[%c0_3, %c0_4, %c128] : memref<1x32x256xf32, #tpu.memory_space<vmem>>, vector<1x32x128xf32>
    %7 = vector.shape_cast %6 : vector<1x32x128xf32> to vector<32x128xf32>
    %8 = arith.addf %4, %7 : vector<32x128xf32>
    %9 = arith.maximumf %5, %7 : vector<32x128xf32>
    %c0_5 = arith.constant 0 : index
    %c0_6 = arith.constant 0 : index
    %c0_7 = arith.constant 0 : index
    %10 = vector.load %arg6[%c0_5, %c0_6, %c0_7] : memref<1x32x128xf32, #tpu.memory_space<vmem>>, vector<1x32x128xf32>
    %11 = vector.shape_cast %10 : vector<1x32x128xf32> to vector<32x128xf32>
    %12 = vector.shape_cast %8 : vector<32x128xf32> to vector<1x32x128xf32>
    tpu.vector_store %arg6[%c0_5, %c0_6, %c0_7], %12 {strides = array<i32>} : memref<1x32x128xf32, #tpu.memory_space<vmem>>, vector<1x32x128xf32>,
    %c0_8 = arith.constant 0 : index
    %c0_9 = arith.constant 0 : index
    %c0_10 = arith.constant 0 : index
    %13 = vector.load %arg7[%c0_8, %c0_9, %c0_10] : memref<1x32x128xf32, #tpu.memory_space<vmem>>, vector<1x32x128xf32>
    %14 = vector.shape_cast %13 : vector<1x32x128xf32> to vector<32x128xf32>
    %15 = vector.shape_cast %9 : vector<32x128xf32> to vector<1x32x128xf32>
    tpu.vector_store %arg7[%c0_8, %c0_9, %c0_10], %15 {strides = array<i32>} : memref<1x32x128xf32, #tpu.memory_space<vmem>>, vector<1x32x128xf32>,
    %c0_i32 = arith.constant 0 : i32
    %16 = arith.cmpi eq, %arg1, %c0_i32 : i32
    %17 = arith.extui %16 : i1 to i32
    %c0_i32_11 = arith.constant 0 : i32
    %18 = arith.cmpi ne, %17, %c0_i32_11 : i32
    scf.if %18 {
      %c0_12 = arith.constant 0 : index
      %c0_13 = arith.constant 0 : index
      %c0_14 = arith.constant 0 : index
      %19 = vector.load %arg6[%c0_12, %c0_13, %c0_14] : memref<1x32x128xf32, #tpu.memory_space<vmem>>, vector<1x32x128xf32>
      %cst_15 = arith.constant dense<0.000000e+00> : vector<1x32xf32>
      %20 = vector.multi_reduction <add>, %19, %cst_15 [2] : vector<1x32x128xf32> to vector<1x32xf32>
      %cst_16 = arith.constant 3.906250e-03 : f32
      %21 = vector.broadcast %cst_16 : f32 to vector<1x32xf32>
      %22 = arith.mulf %20, %21 : vector<1x32xf32>
      %c0_17 = arith.constant 0 : index
      %c0_18 = arith.constant 0 : index
      %c0_19 = arith.constant 0 : index
      %23 = vector.load %arg7[%c0_17, %c0_18, %c0_19] : memref<1x32x128xf32, #tpu.memory_space<vmem>>, vector<1x32x128xf32>
      %cst_20 = arith.constant dense<0xFF800000> : vector<1x32xf32>
      %24 = vector.multi_reduction <maximumf>, %23, %cst_20 [2] : vector<1x32x128xf32> to vector<1x32xf32>
      %25 = tpu.concatenate %22, %24 in 0 : vector<1x32xf32>, vector<1x32xf32> -> vector<2x32xf32>
      %c0_21 = arith.constant 0 : index
      %c0_22 = arith.constant 0 : index
      %26 = vector.load %arg3[%c0_21, %c0_22] : memref<32x2xf32, #tpu.memory_space<vmem>>, vector<32x2xf32>
      %c0_23 = arith.constant 0 : index
      %c0_24 = arith.constant 0 : index
      %27 = vector.load %arg4[%c0_23, %c0_24] : memref<2x32xf32, #tpu.memory_space<vmem>>, vector<2x32xf32>
      %cst_25 = arith.constant dense<0.000000e+00> : vector<2x2xf32>
      %28 = tpu.matmul %25, %26, %cst_25 {dimension_numbers = #tpu.dot_dimension_numbers<[1], [0], [0], [1], [0, 0, 1, 1], [], []>} : vector<2x32xf32>, vector<32x2xf32>, vector<2x2xf32> -> vector<2x2xf32>
      %cst_26 = arith.constant 0.000000e+00 : f32
      %29 = vector.broadcast %cst_26 : f32 to vector<2x2xf32>
      %30 = arith.maximumf %28, %29 : vector<2x2xf32>
      %cst_27 = arith.constant dense<0.000000e+00> : vector<2x32xf32>
      %31 = tpu.matmul %30, %27, %cst_27 {dimension_numbers = #tpu.dot_dimension_numbers<[1], [0], [0], [1], [0, 0, 1, 1], [], []>} : vector<2x2xf32>, vector<2x32xf32>, vector<2x32xf32> -> vector<2x32xf32>
      %32 = vector.extract_strided_slice %31 {offsets = [0, 0], sizes = [1, 32], strides = [1, 1]} : vector<2x32xf32> to vector<1x32xf32>
      %33 = vector.extract_strided_slice %31 {offsets = [1, 0], sizes = [1, 32], strides = [1, 1]} : vector<2x32xf32> to vector<1x32xf32>
      %34 = arith.addf %32, %33 : vector<1x32xf32>
      %35 = arith.negf %34 : vector<1x32xf32>
      %36 = math.exp %35 : vector<1x32xf32>
      %cst_28 = arith.constant 1.000000e+00 : f32
      %37 = vector.broadcast %cst_28 : f32 to vector<1x32xf32>
      %38 = arith.addf %37, %36 : vector<1x32xf32>
      %39 = arith.divf %37, %38 : vector<1x32xf32>
      %40 = vector.shape_cast %39 : vector<1x32xf32> to vector<1x1x32xf32>
      %c0_29 = arith.constant 0 : index
      %c0_30 = arith.constant 0 : index
      %c0_31 = arith.constant 0 : index
      %41 = vector.load %arg5[%c0_29, %c0_30, %c0_31] : memref<1x1x32xf32, #tpu.memory_space<vmem>>, vector<1x1x32xf32>
      tpu.vector_store %arg5[%c0_29, %c0_30, %c0_31], %40 {strides = array<i32>} : memref<1x1x32xf32, #tpu.memory_space<vmem>>, vector<1x1x32xf32>,
    } else {
    }
    return
  }
  func.func @transform_0(%arg0: i32, %arg1: i32) -> (i32, i32, i32) {
    %c0_i32 = arith.constant 0 : i32
    %c0_i32_0 = arith.constant 0 : i32
    return %arg0, %c0_i32, %arg1 : i32, i32, i32
  }
  func.func @transform_1(%arg0: i32, %arg1: i32) -> (i32, i32) {
    %c0_i32 = arith.constant 0 : i32
    %c0_i32_0 = arith.constant 0 : i32
    %c0_i32_1 = arith.constant 0 : i32
    return %c0_i32, %c0_i32_0 : i32, i32
  }
  func.func @transform_2(%arg0: i32, %arg1: i32) -> (i32, i32) {
    %c0_i32 = arith.constant 0 : i32
    %c0_i32_0 = arith.constant 0 : i32
    %c0_i32_1 = arith.constant 0 : i32
    return %c0_i32, %c0_i32_0 : i32, i32
  }
  func.func @transform_3(%arg0: i32, %arg1: i32) -> (i32, i32, i32) {
    %c0_i32 = arith.constant 0 : i32
    %c0_i32_0 = arith.constant 0 : i32
    %c0_i32_1 = arith.constant 0 : i32
    return %arg0, %c0_i32, %c0_i32_0 : i32, i32, i32
  }
}

</mosaic_0001>

<bundles_post_ra>
// kernel: tpu_custom_call.1
= control target key start
LH: loop header
LB: loop body
LE: loop exit
PB: predicated region body
PF: predicated region fallthrough
CT: control target
= control target key end

     0   :  { %8 = vsyncpa [#allocation5], 0  ;;  %s1036_s0 = inlined_call_operand.hbm [shape: f32[2,32,256], index: 0, kind: input, shape index: {}]   ;;  %s1037_s1 = inlined_call_operand.vmem [shape: f32[32,2], index: 1, kind: input, shape index: {}]   ;;  %s1038_s2 = inlined_call_operand.vmem [shape: f32[2,32], index: 2, kind: input, shape index: {}]   ;;  %s1039_s3 = inlined_call_operand.hbm [shape: f32[2,1,32], index: 3, kind: output, shape index: {}]  }
   0x1   :  { %10 = vsyncpa [#allocation5 + $0x1], 0 }
   0x2   :  { %11 = vsyncpa [#allocation6], 0 }
   0x3   :  { %13 = vsyncpa [#allocation6 + $0x1], 0  ;;  %s845_s12 = smov 0   ;;  %s847_s13 = smov 0  }
   0x4   :  { %s849_s14 = smov 0   ;;  %s851_s15 = smov 0  }
   0x5   :  { %s853_s16 = smov 0   ;;  %s855_s17 = smov 0  }
   0x6 LB: > { %s587_s18 = sadd.s32 4294967295, %s816_s17   ;;  %s588_s19 = sadd.s32 4294967294, %s816_s17   ;;  %s816_s17 = sphi %s855_s17, %s19_s17   ;;  %s812_s16 = sphi %s853_s16, %s1054_s16   ;;  %s808_s15 = sphi %s851_s15, %s1053_s15   ;;  %s804_s14 = sphi %s849_s14, %s1052_s14   ;;  %s800_s13 = sphi %s847_s13, %s1051_s13   ;;  %s796_s12 = sphi %s845_s12, %s1050_s12  }
   0x7   : > { %s31_s20 = sadd.s32 1, %s812_s16  ;;  %s40_s21 = sadd.s32 1, %s804_s14 }
   0x8   : > { %p33_p0 = scmp.ge.s32.totalorder %s31_s20, 2  ;;  %p47_p1 = scmp.ne.s32.totalorder %s804_s14, %s800_s13 }
   0x9   : > { %p48_p2 = scmp.eq.s32.totalorder %s816_s17, 0  ;;  %p53_p3 = scmp.ne.s32.totalorder %s800_s13, %s796_s12 }
   0xa   : > { %s1056_s20 = smov (%p33_p0, %s31_s20), 0  ;;  %p54_p5 = scmp.eq.s32.totalorder %s587_s18, 0 }
   0xb   : > { %p886_p4 = por %p48_p2, %p47_p1  ;;  %s35_s23 = ssub.s32 %s812_s16, %s1056_s20 }
   0xc   : > { %p119_p6 = scmp.eq.s32.totalorder %s587_s18, 1  ;;  %p38_p7 = scmp.eq.s32.totalorder %s35_s23, 0 }
   0xd   : > { %p892_p8 = por %p54_p5, %p53_p3  ;;  %p125_p10 = scmp.eq.s32.totalorder %s588_s19, 1 }
   0xe   : > { %p896_p9 = por %p119_p6, %p47_p1  ;;  %p645_p13 = scmp.lt.s32.totalorder %s816_s17, 2 }
   0xf   : > { %s901_s26 = scalar_select %p38_p7, %s804_s14, %s40_s21  }
  0x10   : > { %s1043_s25 = scalar_select %p896_p9, 1, 0 }
  0x11   : > { %p903_p11 = por %p125_p10, %p53_p3  ;;  %s151_s28 = sand.u32 1, %s804_s14  }
  0x12   : > { %s591_s29 = sshll.u32 %s151_s28, 6  ;;  %s603_s30 = sshll.u32 %s812_s16, 10 }
  0x13   : > { %s1044_s27 = scalar_select %p903_p11, 1, 0 }
  0x14   : > { %s914_s6 = scalar_lea.hbm %s1036_s0, %s603_s30  ;;  %s155_s7 = scalar_lea.vmem [#allocation4], %s591_s29 }
  0x15   : > { %s164_s8 = sshll.u32 %s155_s7, 4  ;;  %p920_p0 = pnand %p645_p13, %p886_p4  ;;  %s916_s8 = int_to_ptr.vmem [resolvable:$true] %s164_s8 }
  0x16   : > { %s925_s10 = scalar_lea.sflag [#allocation5], %s151_s28  ;;  %s704_s11 = scalar_lea.hbm %s914_s6, 1024 }
  0x17   : > { %p705_p2 = scmp.ne.s32.totalorder %s914_s6, %s704_s11  ;;  %p706_p3 = pneg %p920_p0 }
  0x18   : > { %s709_s21 = scalar_lea.hbm %s1036_s0, 2048  ;;  %p710_p4 = scmp.lt.u32.totalorder %s914_s6, %s1036_s0 }
  0x19   : > { %p707_p5 = pnand %p706_p3, %p705_p2  ;;  %p711_p7 = scmp.lt.u32.totalorder %s709_s21, %s704_s11 }
  0x1a   : > { %p713_p13 = scmp.lt.u32.totalorder %s704_s11, %s914_s6 }
  0x1b   : > { %p708_p6 = pneg %p707_p5  ;;  %p712_p10 = por %p711_p7, %p710_p4 }
  0x1d   : > { %p714_p12 = por %p713_p13, %p712_p10 }
  0x1f   : > { %p715_p1 = pnand %p714_p12, %p708_p6 }
  0x21   : > { %718 = shalt.err (!%p715_p1)
}
  0x22   : > { %s719_s28 = scalar_lea.vmem %s916_s8, 1024  ;;  %s818_s29 = smov [#allocation4]  }
  0x23   : > { %p720_p2 = scmp.ne.s32.totalorder %s916_s8, %s719_s28  ;;  %s724_s30 = sshll.u32 %s818_s29, 4  ;;  %s725_s30 = int_to_ptr.vmem [resolvable:$false] %s724_s30 }
  0x24   : > { %s726_s4 = scalar_lea.vmem %s725_s30, 2048  ;;  %p727_p9 = scmp.lt.s32.totalorder %s916_s8, %s725_s30 }
  0x25   : > { %p722_p5 = pnand %p720_p2, %p706_p3  ;;  %p728_p4 = scmp.lt.s32.totalorder %s726_s4, %s719_s28 }
  0x27   : > { %p723_p11 = pneg %p722_p5  ;;  %p729_p7 = por %p728_p4, %p727_p9 }
  0x29   : > { %p730_p10 = pnand %p729_p7, %p723_p11 }
  0x2b   : > { %733 = shalt.err (!%p730_p10)
}
  0x2c   : > { %s819_s5 = smov 256   ;;  %s820_s7 = smov 16  }
  0x2d   : > { %640 = dma.hbm_to_vmem [thread:$0]  (!%p920_p0), %s914_s6, 1024, %s916_s8, %s925_s10, %s819_s5, %s819_s5, %s820_s7  }
  0x2e   : > { %p172_p12 = scmp.lt.s32.totalorder %s816_s17, 3  ;;  %p1046_p1 = scmp.ge.s32.totalorder %s816_s17, 1 }
  0x30   : > { %p173_p3 = pnand %p1046_p1, %p172_p12 }
  0x31   : > { %s957_s11 = sand.u32 (!%p173_p3), 1, %s800_s13  }
  0x32   : > { %176 = sbr.rel (%p173_p3) target bundleno = 691 (0x2b3), region = 32  ;;  %s595_s18 = sshll.u32 (!%p173_p3), %s957_s11, 6 }
  0x33   : > { %s179_s19 = scalar_lea.sflag (!%p173_p3), [#allocation5], %s957_s11  ;;  %s182_s21 = scalar_lea.vmem (!%p173_p3), [#allocation4], %s595_s18 }
  0x39   : > { %787 = dma.done.wait (%p892_p8), %s179_s19, 1024  }
  0x3a   : > { %789 = vsyncadd (%p892_p8), %s179_s19, 4294966272  ;;  %v207_v0 = vld [vmem:[%s182_s21 + $0x20] sm:$0xff]  ;;  %v219_v1 = vld [vmem:[%s182_s21 + $0x28] sm:$0xff]  ;;  %v821_v23 = vmov 0.0|0.0   ;;  %vm822_vm0 = vmmov 0   ;;  %v823_v27 = vmov 0.0   ;;  %v273_v28 = vlaneseq }
  0x3b   : > { %v205_v2 = vld [vmem:[%s182_s21] sm:$0xff]  ;;  %v223_v3 = vadd.f32 %v219_v1, %v207_v0  ;;  %v217_v4 = vld [vmem:[%s182_s21 + $0x8] sm:$0xff]  ;;  %v208_v5 = vld [vmem:[%s182_s21 + $0x30] sm:$0xff]  ;;  %v215_v16 = vmax.f32 %v207_v0, -3.4028235e+38  ;;  %627 = vmatprep.subr.bf16.mxu0 %v821_v23  ;;  %619 = vmatprep.mubr.msk.f32.mxu0 %vm822_vm0, %v823_v27  ;;  %vm284_vm1 = vcmask 130112  }
  0x3c   : > { %v221_v6 = vadd.f32 %v217_v4, %v205_v2  ;;  %v220_v7 = vld [vmem:[%s182_s21 + $0x38] sm:$0xff]  ;;  %v206_v8 = vld [vmem:[%s182_s21 + $0x10] sm:$0xff]  ;;  %v213_v12 = vmax.f32 %v205_v2, -3.4028235e+38  ;;  %v216_v15 = vmax.f32 %v208_v5, -3.4028235e+38  ;;  %622 = vmatprep.subr.mxu1 %v823_v27  ;;  %624 = vmatprep.mubr.msk.f32.mxu1 %vm822_vm0, %v823_v27 }
  0x3d   : > { %v218_v9 = vld [vmem:[%s182_s21 + $0x18] sm:$0xff]  ;;  %249 = vadd.xlane.f32.xlu1 %v223_v3  ;;  %v224_v10 = vadd.f32 %v220_v7, %v208_v5  ;;  %v214_v11 = vmax.f32 %v206_v8, -3.4028235e+38  ;;  %v227_v19 = vmax.f32 %v215_v16, %v219_v1  ;;  %v327_v20 = vld [vmem:[%s1037_s1] sm:$0xff]  ;;  %v328_v21 = vld [vmem:[%s1037_s1 + $0x8] sm:$0xff]  ;;  %v274_v29 = vand.u32 127, %v273_v28 }
  0x3e   : > { %245 = vadd.xlane.f32.xlu0 %v221_v6  ;;  %v222_v13 = vadd.f32 %v218_v9, %v206_v8  ;;  %v225_v17 = vmax.f32 %v213_v12, %v217_v4  ;;  %v228_v18 = vmax.f32 %v216_v15, %v220_v7  ;;  %v628_v22 = vpack.c.bf16 %v328_v21, %v327_v20  ;;  %v329_v24 = vld [vmem:[%s1037_s1 + $0x10] sm:$0xff]  ;;  %v330_v25 = vld [vmem:[%s1037_s1 + $0x18] sm:$0xff]  ;;  %v331_v1 = vld [vmem:[%s1038_s2] sm:$0x3]  ;;  %s600_s4 = sshll.u32 %s808_s15, 4  ;;  %s203_s5 = scalar_lea.vmem [#allocation7], %s957_s11 }
  0x3f   : > { %v226_v14 = vmax.f32 %v214_v11, %v218_v9  ;;  %v631_v26 = vpack.c.bf16 %v330_v25, %v329_v24  ;;  %v279_v31 = vadd.s32 4294967288, %v274_v29  ;;  %v276_v32 = vshrl.u32 %v273_v28, 7  ;;  %s510_s7 = sshll.u32 %s203_s5, 4  ;;  %s987_s21 = scalar_lea.hbm %s1039_s3, %s600_s4  ;;  %s989_s7 = int_to_ptr.vmem [resolvable:$true] %s510_s7 }
  0x40   : > { %629 = vmatpush3.bf16.msra.mxu0 %v628_v22  ;;  %v286_v34 = vadd.s32 4294967280, %v274_v29  ;;  %v293_v39 = vadd.s32 4294967272, %v274_v29  ;;  %vm291_vm2 = vcmask 195712   ;;  %vm298_vm3 = vcmask 261312   ;;  %s498_s24 = scalar_lea.sflag [#allocation6], %s957_s11  ;;  %s734_s6 = scalar_lea.vmem %s989_s7, 16 }
  0x41   : > { %251 = vadd.xlane.f32.xlu1 %v224_v10  ;;  %630 = vmatprep.subr.bf16.mxu0 %v821_v23  ;;  %v282_v36 = vsub.s32 %v279_v31, %v276_v32  ;;  %v277_v37 = vsub.s32 %v274_v29, %v276_v32  ;;  %vm325_vm4 = vcmask 1040384   ;;  %vm332_vm5 = vcmask 261120   ;;  %p735_p8 = scmp.ne.s32.totalorder %s989_s7, %s734_s6  ;;  %p1047_p9 = scmp.ne.s32.totalorder %s1043_s25, 0 }
  0x42   : > { %247 = vadd.xlane.f32.xlu0 %v222_v13  ;;  %v289_v42 = vsub.s32 %v286_v34, %v276_v32  ;;  %v296_v47 = vsub.s32 %v293_v39, %v276_v32  ;;  %vm411_vm6 = vcmask 1041408   ;;  %vm407_vm7 = vcmask 15360   ;;  %s824_s15 = smov [#allocation7]  }
  0x43   : > { %623 = vmatpush3.msk.msra.mxu1 %vm411_vm6, %v331_v1  ;;  %vm495_vm8 = vcmask 253952   ;;  %p736_p11 = pnand %p735_p8, %p1047_p9  ;;  %s738_s8 = sshll.u32 %s824_s15, 4  ;;  %s739_s8 = int_to_ptr.vmem [resolvable:$false] %s738_s8 }
  0x44   : > { %632 = vmatpush3.bf16.msra.mxu0 %v631_v26  ;;  %s740_s9 = scalar_lea.vmem %s739_s8, 32  ;;  %p741_p6 = scmp.lt.s32.totalorder %s989_s7, %s739_s8 }
  0x45   : > { %263 = vmax.xlane.f32.xlu1 %v226_v14  ;;  %p737_p0 = pneg %p736_p11  ;;  %p742_p13 = scmp.lt.s32.totalorder %s740_s9, %s734_s6 }
  0x46   : > { %261 = vmax.xlane.f32.xlu0 %v225_v17 }
  0x47   : > { %p743_p2 = por %p742_p13, %p741_p6 }
  0x49   : > { %267 = vmax.xlane.f32.xlu1 %v228_v18  ;;  %p744_p5 = pnand %p743_p2, %p737_p0 }
  0x4a   : > { %265 = vmax.xlane.f32.xlu0 %v227_v19 }
  0xca   : > { %v250_v30 = vpop.xlane.xlu1 %249 }
  0xcb   : > { %v246_v33 = vpop.xlane.xlu0 %245  ;;  %v255_v43 = vmul.f32 0.00390625, %v250_v30 }
  0xcc   : > { %v253_v38 = vmul.f32 0.00390625, %v246_v33 }
  0xcd   : > { %v290_v53 = vrot.slane %v255_v43, %v289_v42 }
  0xce   : > { %v252_v35 = vpop.xlane.xlu1 %251  ;;  %v278_v46 = vrot.slane %v253_v38, %v277_v37 }
  0xcf   : > { %v248_v40 = vpop.xlane.xlu0 %247  ;;  %v256_v48 = vmul.f32 0.00390625, %v252_v35 }
  0xd0   : > { %v254_v41 = vmul.f32 0.00390625, %v248_v40 }
  0xd1   : > { %v297_v55 = vrot.slane %v256_v48, %v296_v47 }
  0xd2   : > { %v283_v44 = vrot.slane %v254_v41, %v282_v36  ;;  %v264_v45 = vpop.xlane.xlu1 %263 }
  0xd3   : > { %v262_v49 = vpop.xlane.xlu0 %261  ;;  %v312_v51 = vrot.slane %v264_v45, %v282_v36 }
  0xd4   : > { %v285_v50 = vsel %vm284_vm1, %v283_v44, %v278_v46  ;;  %v308_v52 = vrot.slane %v262_v49, %v277_v37 }
  0xd5   : > { %v292_v59 = vsel %vm291_vm2, %v290_v53, %v285_v50 }
  0xd6   : > { %v268_v54 = vpop.xlane.xlu1 %267  ;;  %v313_v60 = vsel %vm284_vm1, %v312_v51, %v308_v52  ;;  %v299_v63 = vsel %vm298_vm3, %v297_v55, %v292_v59 }
  0xd7   : > { %v266_v56 = vpop.xlane.xlu0 %265  ;;  %v322_v57 = vrot.slane %v268_v54, %v296_v47 }
  0xd8   : > { %v317_v58 = vrot.slane %v266_v56, %v289_v42 }
  0xda   : > { %v318_v61 = vsel %vm291_vm2, %v317_v58, %v313_v60 }
  0xdb   : > { %v323_v62 = vsel %vm298_vm3, %v322_v57, %v318_v61 }
  0xdc   : > { %v326_v0 = vsel %vm325_vm4, %v299_v63, %v323_v62 }
  0xdd   : > { %620 = vmatmul.mubr.msk.f32.vlgmr.msra.gmra.mrb[0].mxu0 %vm332_vm5, %v326_v0 }
 0x1b0   : > { %v402_v2 = vpop.f32.mrb[0].mxu0 }
 0x1b1   : > { %v406_v3 = vmax.f32 %v402_v2, 0.0  ;;  %v621_v4 = vpop.f32.mrb[1].mxu0 }
 0x1b3   : > { %625 = vmatmul.mubr.msk.f32.vlgmr.msra.gmra.mrb[0].mxu1 %vm407_vm7, %v406_v3 }
 0x286   : > { %v481_v5 = vpop.f32.mrb[0].mxu1 }
 0x287   : > { %v486_v6 = vrot.slane %v481_v5, 1  ;;  %v626_v7 = vpop.f32.mrb[1].mxu1 }
 0x289   : > { %v488_v8 = vadd.f32 %v486_v6, %v481_v5 }
 0x28b   : > { %v599_v9 = vmul.f32 -1.442695, %v488_v8 }
 0x28d   : > { %700 = vpow2.f32 %v599_v9 }
 0x297   : > { %v701_v10 = vpop.eup %700 }
 0x298   : > { %v492_v11 = vadd.f32 1.0, %v701_v10 }
 0x29a   : > { %702 = vrcp.f32 %v492_v11 }
 0x2a4   : > { %v703_v12 = vpop.eup %702 }
 0x2a5   : > { %496 = vst.msk [vmem:[%s203_s5] sm:$0x1] %vm495_vm8, %v703_v12 }
 0x2a6   : > { %747 = shalt.err (!%p744_p5)
}
 0x2a7   : > { %s748_s11 = scalar_lea.hbm %s987_s21, 16  ;;  %s752_s23 = scalar_lea.hbm %s1039_s3, 32 }
 0x2a8   : > { %p749_p4 = scmp.ne.s32.totalorder %s987_s21, %s748_s11  ;;  %p753_p12 = scmp.lt.u32.totalorder %s987_s21, %s1039_s3 }
 0x2a9   : > { %p754_p1 = scmp.lt.u32.totalorder %s752_s23, %s748_s11  ;;  %p756_p8 = scmp.lt.u32.totalorder %s748_s11, %s987_s21 }
 0x2aa   : > { %p750_p7 = pnand %p749_p4, %p1047_p9 }
 0x2ab   : > { %p755_p3 = por %p754_p1, %p753_p12 }
 0x2ac   : > { %p751_p10 = pneg %p750_p7 }
 0x2ad   : > { %p757_p11 = por %p756_p8, %p755_p3 }
 0x2af   : > { %p758_p0 = pnand %p757_p11, %p751_p10 }
 0x2b1   : > { %761 = shalt.err (!%p758_p0)
}
 0x2b2   : > { %635 = dma.vmem_to_hbm [thread:$0]  (%p1047_p9), %s989_s7, 16, %s987_s21, %s498_s24  }
 0x2b3 PF: > { %s522_s30 = sand.u32 1, %s796_s12   ;;  %p1048_p6 = scmp.ne.s32.totalorder %s1044_s27, 0 }
 0x2b4   : > { %p1049_p13 = scmp.ge.s32.totalorder %s816_s17, 2  ;;  %s523_s4 = scalar_lea.sflag [#allocation6], %s522_s30 }
 0x2b6   : > { %p642_p2 = pnand %p1049_p13, %p1048_p6 }
 0x2b8   : > { %791 = dma.done.wait (!%p642_p2), %s523_s4, 16  }
 0x2b9   : > { %793 = vsyncadd (!%p642_p2), %s523_s4, 4294967280  ;;  %s19_s17 = sadd.s32 1, %s816_s17   ;;  %s1050_s12 = smov %s800_s13 }
 0x2ba   : > { %p16_p5 = scmp.ge.s32.totalorder %s19_s17, 4   ;;  %s1051_s13 = smov %s804_s14 }
 0x2bb   : > { %s1052_s14 = smov %s901_s26  ;;  %s1053_s15 = smov %s812_s16 }
 0x2bc   : > { %s1054_s16 = smov %s1056_s20  ;;  %18 = sbr.rel (!%p16_p5) target bundleno = 6 (0x6), region = 81 }
 0x2c3   :  { %527 = vsyncpa [#allocation5], 1 }
 0x2c4   :  { %529 = vsyncpa [#allocation5 + $0x1], 1 }
 0x2c5   :  { %530 = vsyncpa [#allocation6], 1 }
 0x2c6   :  { %532 = vsyncpa [#allocation6 + $0x1], 1 }

</bundles_post_ra>
